<compile_context>
chip_gen: v7x
topology: tpu7x:2x2x1
jax: 0.10.0
libtpu: 0.0.40
codegen_flags: <defaults>
</compile_context>

<pallas_src>
import functools

import jax
import jax.numpy as jnp
from jax import lax
from jax.experimental import pallas as pl
from jax.experimental.pallas import tpu as pltpu


# ---------------------------------------------------------------------------
# Fused single-pass kernel: pool + squeeze MLP + scale/shift on one block.
# ---------------------------------------------------------------------------
def _se_fused_kernel(x_ref, w1a_ref, w1m_ref, b1_ref, w2g_ref, w2b_ref,
                     b2g_ref, b2b_ref, o_ref, *, channels_last, hw):
    # x_ref: (Bt, C, HW) if not channels_last (spatial on lanes)
    #        (Bt, HW, C) if channels_last     (channels on lanes)
    x = x_ref[...].astype(jnp.float32)
    red_axis = 1 if channels_last else 2

    # GlobalPool: adaptive avg + adaptive max over the spatial axis -> (Bt, C)
    avg = jnp.sum(x, axis=red_axis) * (1.0 / hw)
    mx = jnp.max(x, axis=red_axis)

    # conv1 (1x1, bias): weights pre-split into avg/max halves so there is no
    # channel concat; pooled rows are lane-dense (Bt, C) matrices.
    h = (jnp.dot(avg, w1a_ref[...], preferred_element_type=jnp.float32)
         + jnp.dot(mx, w1m_ref[...], preferred_element_type=jnp.float32)
         + b1_ref[...])                              # (Bt, hidden)
    h = h * jnp.tanh(jax.nn.softplus(h))             # Mish

    # conv2 (1x1, bias): pre-split into gamma/beta halves (no output slicing).
    gam = jnp.dot(h, w2g_ref[...], preferred_element_type=jnp.float32) + b2g_ref[...]
    bet = jnp.dot(h, w2b_ref[...], preferred_element_type=jnp.float32) + b2b_ref[...]
    scale = jax.nn.sigmoid(gam)                      # (Bt, C)

    if channels_last:
        y = scale[:, None, :] * x + bet[:, None, :]
    else:
        y = scale[:, :, None] * x + bet[:, :, None]
    o_ref[...] = y.astype(o_ref.dtype)


# ---------------------------------------------------------------------------
# Two-pass fallback for feature maps too large for a whole-image block.
# Pass A: per-channel sum/max accumulated over spatial tiles.
# ---------------------------------------------------------------------------
def _pool_kernel(x_ref, sum_ref, max_ref, *, hw_total, hw_tile):
    h_idx = pl.program_id(1)

    @pl.when(h_idx == 0)
    def _():
        sum_ref[...] = jnp.zeros_like(sum_ref)
        max_ref[...] = jnp.full_like(max_ref, -jnp.inf)

    x = x_ref[...].astype(jnp.float32)               # (1, C, hw_tile)
    # Mask the ragged last tile (out-of-bounds lanes hold unspecified data).
    col = h_idx * hw_tile + lax.broadcasted_iota(jnp.int32, x.shape, 2)
    valid = col < hw_total
    x_sum = jnp.where(valid, x, 0.0)
    x_max = jnp.where(valid, x, -jnp.inf)

    sum_ref[...] += jnp.sum(x_sum, axis=2, keepdims=True)
    max_ref[...] = jnp.maximum(max_ref[...], jnp.max(x_max, axis=2, keepdims=True))


# Pass B: y = scale * x + shift over spatial tiles.
def _affine_kernel(x_ref, s_ref, t_ref, o_ref):
    x = x_ref[...].astype(jnp.float32)               # (1, C, hw_tile)
    o_ref[...] = (s_ref[...] * x + t_ref[...]).astype(o_ref.dtype)


# ---------------------------------------------------------------------------
# Wrappers
# ---------------------------------------------------------------------------
def _split_params(w1, b1, w2, b2, C):
    """Pre-split / pre-transpose the 1x1-conv weights (one-time XLA ops)."""
    hidden = w1.shape[0]
    w1a_t = w1[:, :C].T.astype(jnp.float32)          # (C, hidden)   avg half
    w1m_t = w1[:, C:].T.astype(jnp.float32)          # (C, hidden)   max half
    b1r = b1.reshape(1, hidden).astype(jnp.float32)  # (1, hidden)
    w2g_t = w2[:C, :].T.astype(jnp.float32)          # (hidden, C)   gamma half
    w2b_t = w2[C:, :].T.astype(jnp.float32)          # (hidden, C)   beta half
    b2g = b2[:C].reshape(1, C).astype(jnp.float32)   # (1, C)
    b2b = b2[C:].reshape(1, C).astype(jnp.float32)   # (1, C)
    return (w1a_t, w1m_t, b1r, w2g_t, w2b_t, b2g, b2b)


def _vmem_limit(block_bytes):
    return int(min(128 * 2**20, max(32 * 2**20, block_bytes + 8 * 2**20)))


def _se_fused(x_nchw, params, *, channels_last, max_block_bytes):
    B, C, H, W = x_nchw.shape
    HW = H * W
    itemsize = x_nchw.dtype.itemsize
    per_image_bytes = C * HW * itemsize

    if channels_last:
        x = jnp.transpose(x_nchw, (0, 2, 3, 1)).reshape(B, HW, C)
        block = lambda bt: (bt, HW, C)
    else:
        x = x_nchw.reshape(B, C, HW)
        block = lambda bt: (bt, C, HW)

    # Batch images per grid step: largest divisor of B whose double-buffered
    # in+out blocks fit the budget, preferring >= 2 grid steps (v7x megacore).
    fit = [d for d in range(1, B + 1)
           if B % d == 0 and 4 * d * per_image_bytes <= max_block_bytes]
    if not fit:
        fit = [1]
    multi = [d for d in fit if B // d >= 2]
    bt = max(multi) if multi else max(fit)
    grid = (B // bt,)

    hidden = params[0].shape[1]
    kernel = functools.partial(_se_fused_kernel,
                               channels_last=channels_last, hw=float(HW))

    out = pl.pallas_call(
        kernel,
        out_shape=jax.ShapeDtypeStruct(x.shape, x.dtype),
        grid_spec=pltpu.PrefetchScalarGridSpec(
            num_scalar_prefetch=0,
            grid=grid,
            in_specs=[
                pl.BlockSpec(block(bt), lambda i: (i, 0, 0)),
                pl.BlockSpec((C, hidden), lambda i: (0, 0)),
                pl.BlockSpec((C, hidden), lambda i: (0, 0)),
                pl.BlockSpec((1, hidden), lambda i: (0, 0)),
                pl.BlockSpec((hidden, C), lambda i: (0, 0)),
                pl.BlockSpec((hidden, C), lambda i: (0, 0)),
                pl.BlockSpec((1, C), lambda i: (0, 0)),
                pl.BlockSpec((1, C), lambda i: (0, 0)),
            ],
            out_specs=pl.BlockSpec(block(bt), lambda i: (i, 0, 0)),
        ),
        compiler_params=pltpu.CompilerParams(
            dimension_semantics=("parallel",),
            vmem_limit_bytes=_vmem_limit(4 * bt * per_image_bytes),
        ),
    )(x, *params)

    if channels_last:
        return out.reshape(B, H, W, C).transpose(0, 3, 1, 2)
    return out.reshape(B, C, H, W)


def _se_tiled(x_nchw, params, *, max_block_bytes, force_hw_tile=None):
    """Spatially-tiled two-pass variant for maps that overflow the VMEM budget."""
    B, C, H, W = x_nchw.shape
    HW = H * W
    itemsize = x_nchw.dtype.itemsize
    x = x_nchw.reshape(B, C, HW)

    if force_hw_tile is not None:
        hw_tile = int(force_hw_tile)
    else:
        hw_tile = max_block_bytes // (4 * C * itemsize)
        hw_tile = max(128, (hw_tile // 128) * 128)
        hw_tile = min(hw_tile, HW)
    n_hw = pl.cdiv(HW, hw_tile)
    vmem = _vmem_limit(4 * C * hw_tile * itemsize)

    # Pass A: per-channel sum/max, reduction axis last ("arbitrary").
    pool = functools.partial(_pool_kernel, hw_total=HW, hw_tile=hw_tile)
    sums, maxs = pl.pallas_call(
        pool,
        out_shape=(jax.ShapeDtypeStruct((B, C, 1), jnp.float32),
                   jax.ShapeDtypeStruct((B, C, 1), jnp.float32)),
        grid_spec=pltpu.PrefetchScalarGridSpec(
            num_scalar_prefetch=0,
            grid=(B, n_hw),
            in_specs=[pl.BlockSpec((1, C, hw_tile), lambda b, h: (b, 0, h))],
            out_specs=[pl.BlockSpec((1, C, 1), lambda b, h: (b, 0, 0)),
                       pl.BlockSpec((1, C, 1), lambda b, h: (b, 0, 0))],
        ),
        compiler_params=pltpu.CompilerParams(
            dimension_semantics=("parallel", "arbitrary"),
            vmem_limit_bytes=vmem,
        ),
    )(x)

    # Tiny squeeze MLP on (B, C) pooled rows (negligible; plain XLA).
    w1a_t, w1m_t, b1r, w2g_t, w2b_t, b2g, b2b = params
    avg = sums[:, :, 0] / HW
    mx = maxs[:, :, 0]
    h = avg @ w1a_t + mx @ w1m_t + b1r
    h = h * jnp.tanh(jax.nn.softplus(h))             # Mish
    scale = jax.nn.sigmoid(h @ w2g_t + b2g)          # (B, C)
    shift = h @ w2b_t + b2b                          # (B, C)

    # Pass B: re-read x in spatial tiles, apply sigmoid(gamma) * x + beta.
    out = pl.pallas_call(
        _affine_kernel,
        out_shape=jax.ShapeDtypeStruct((B, C, HW), x.dtype),
        grid_spec=pltpu.PrefetchScalarGridSpec(
            num_scalar_prefetch=0,
            grid=(B, n_hw),
            in_specs=[
                pl.BlockSpec((1, C, hw_tile), lambda b, h: (b, 0, h)),
                pl.BlockSpec((1, C, 1), lambda b, h: (b, 0, 0)),
                pl.BlockSpec((1, C, 1), lambda b, h: (b, 0, 0)),
            ],
            out_specs=pl.BlockSpec((1, C, hw_tile), lambda b, h: (b, 0, h)),
        ),
        compiler_params=pltpu.CompilerParams(
            dimension_semantics=("parallel", "parallel"),
            vmem_limit_bytes=vmem,
        ),
    )(x, scale[:, :, None], shift[:, :, None])

    return out.reshape(B, C, H, W)


def se_block(x_nchw, w1, b1, w2, b2, *,
             max_block_bytes=16 * 2**20, force_hw_tile=None):
    """SEBlock forward. x_nchw: (B, C, H, W); w1: (hidden, 2C); b1: (hidden,);
    w2: (2C, hidden); b2: (2C,). Returns (B, C, H, W) in x's dtype."""
    B, C, H, W = x_nchw.shape
    HW = H * W
    itemsize = x_nchw.dtype.itemsize
    params = _split_params(w1, b1, w2, b2, C)
    per_image_bytes = C * HW * itemsize

    # Lane-friendly layout choice: spatial on lanes only when HW % 128 == 0.
    channels_last = (HW % 128 != 0)

    if channels_last or 4 * per_image_bytes <= max_block_bytes:
        # TODO(synk): huge channels-last maps (tiny HW, enormous C) would need a
        # channels-on-lanes tiled fallback; they currently use the fused path.
        return _se_fused(x_nchw, params, channels_last=channels_last,
                         max_block_bytes=max_block_bytes)
    return _se_tiled(x_nchw, params, max_block_bytes=max_block_bytes,
                     force_hw_tile=force_hw_tile)


def se_block_ref(x, w1, b1, w2, b2):
    """Pure-JAX reference mirroring the PyTorch forward."""
    B, C, H, W = x.shape
    xf = x.astype(jnp.float32)
    avg = jnp.mean(xf, axis=(2, 3))                  # (B, C)
    mx = jnp.max(xf, axis=(2, 3))                    # (B, C)
    pooled = jnp.concatenate([avg, mx], axis=1)      # (B, 2C)
    h = pooled @ w1.T + b1                           # (B, hidden)
    h = h * jnp.tanh(jax.nn.softplus(h))             # Mish
    out = h @ w2.T + b2                              # (B, 2C)
    gammas = out[:, :C].reshape(B, C, 1, 1)
    betas = out[:, C:].reshape(B, C, 1, 1)
    return (jax.nn.sigmoid(gammas) * xf + betas).astype(x.dtype)


if __name__ == "__main__":
    key = jax.random.PRNGKey(0)
    k = jax.random.split(key, 12)

    # --- Test 1: fused path, spatial-on-lanes layout (HW % 128 == 0) -------
    B, C, H, W = 2, 6, 16, 16
    reduction = 3
    hidden = C // reduction                          # 2
    c2 = 2 * C                                       # 12
    x = jax.random.normal(k[0], (B, C, H, W), dtype=jnp.float32)
    w1 = jax.random.normal(k[1], (hidden, c2), dtype=jnp.float32) * 0.3
    b1 = jax.random.normal(k[2], (hidden,), dtype=jnp.float32) * 0.1
    w2 = jax.random.normal(k[3], (c2, hidden), dtype=jnp.float32) * 0.3
    b2 = jax.random.normal(k[4], (c2,), dtype=jnp.float32) * 0.1

    out = jax.block_until_ready(se_block(x, w1, b1, w2, b2))
    ref = se_block_ref(x, w1, b1, w2, b2)
    assert out.shape == (B, C, H, W)
    assert jnp.allclose(out, ref, atol=1e-5, rtol=1e-5), "fused path mismatch"

    # --- Test 2: fused path, channels-on-lanes layout (HW = 49) ------------
    B2, C2, H2, W2 = 2, 8, 7, 7
    hid2, cc2 = C2 // 2, 2 * C2
    x2 = jax.random.normal(k[5], (B2, C2, H2, W2), dtype=jnp.float32)
    w1_2 = jax.random.normal(k[6], (hid2, cc2), dtype=jnp.float32) * 0.3
    b1_2 = jax.random.normal(k[7], (hid2,), dtype=jnp.float32) * 0.1
    w2_2 = jax.random.normal(k[8], (cc2, hid2), dtype=jnp.float32) * 0.3
    b2_2 = jax.random.normal(k[9], (cc2,), dtype=jnp.float32) * 0.1
    out2 = jax.block_until_ready(se_block(x2, w1_2, b1_2, w2_2, b2_2))
    ref2 = se_block_ref(x2, w1_2, b1_2, w2_2, b2_2)
    assert jnp.allclose(out2, ref2, atol=1e-5, rtol=1e-5), "channels-last mismatch"

    # --- Test 3: two-pass tiled fallback (forced tiny VMEM budget; ragged ---
    #     last spatial tile exercises the in-kernel masking). HW = 384. ------
    B3, C3, H3, W3 = 2, 6, 16, 24
    x3 = jax.random.normal(k[10], (B3, C3, H3, W3), dtype=jnp.float32)
    out3 = jax.block_until_ready(
        se_block(x3, w1, b1, w2, b2, max_block_bytes=4096, force_hw_tile=256))
    ref3 = se_block_ref(x3, w1, b1, w2, b2)
    assert jnp.allclose(out3, ref3, atol=1e-5, rtol=1e-5), "tiled path mismatch"

    print("KERNEL_OK")
</pallas_src>

<mosaic_0001>
module attributes {stable_mosaic.version = 11 : i64} {
  func.func @_se_fused_kernel(%arg0: i32, %arg1: memref<1x6x256xf32, #tpu.memory_space<vmem>>, %arg2: memref<6x2xf32, #tpu.memory_space<vmem>>, %arg3: memref<6x2xf32, #tpu.memory_space<vmem>>, %arg4: memref<1x2xf32, #tpu.memory_space<vmem>>, %arg5: memref<2x6xf32, #tpu.memory_space<vmem>>, %arg6: memref<2x6xf32, #tpu.memory_space<vmem>>, %arg7: memref<1x6xf32, #tpu.memory_space<vmem>>, %arg8: memref<1x6xf32, #tpu.memory_space<vmem>>, %arg9: memref<1x6x256xf32, #tpu.memory_space<vmem>>) attributes {dimension_semantics = [#tpu.dimension_semantics<parallel>], iteration_bounds = array<i64: 2>, scalar_prefetch = 0 : i64, scratch_operands = 0 : i64, tpu.core_type = #tpu.core_type<tc>, window_params = [{transform_indices = @transform_0, window_bounds = array<i64: 1, 6, 256>}, {pipeline_mode = #tpu.pipeline_mode<synchronous>, transform_indices = @transform_1, window_bounds = array<i64: 6, 2>}, {pipeline_mode = #tpu.pipeline_mode<synchronous>, transform_indices = @transform_2, window_bounds = array<i64: 6, 2>}, {pipeline_mode = #tpu.pipeline_mode<synchronous>, transform_indices = @transform_3, window_bounds = array<i64: 1, 2>}, {pipeline_mode = #tpu.pipeline_mode<synchronous>, transform_indices = @transform_4, window_bounds = array<i64: 2, 6>}, {pipeline_mode = #tpu.pipeline_mode<synchronous>, transform_indices = @transform_5, window_bounds = array<i64: 2, 6>}, {pipeline_mode = #tpu.pipeline_mode<synchronous>, transform_indices = @transform_6, window_bounds = array<i64: 1, 6>}, {pipeline_mode = #tpu.pipeline_mode<synchronous>, transform_indices = @transform_7, window_bounds = array<i64: 1, 6>}, {transform_indices = @transform_8, window_bounds = array<i64: 1, 6, 256>}]} {
    %c0 = arith.constant 0 : index
    %c0_0 = arith.constant 0 : index
    %c0_1 = arith.constant 0 : index
    %0 = vector.load %arg1[%c0, %c0_0, %c0_1] : memref<1x6x256xf32, #tpu.memory_space<vmem>>, vector<1x6x256xf32>
    %cst = arith.constant dense<0.000000e+00> : vector<1x6xf32>
    %1 = vector.multi_reduction <add>, %0, %cst [2] : vector<1x6x256xf32> to vector<1x6xf32>
    %cst_2 = arith.constant 3.906250e-03 : f32
    %2 = vector.broadcast %cst_2 : f32 to vector<1x6xf32>
    %3 = arith.mulf %1, %2 : vector<1x6xf32>
    %cst_3 = arith.constant dense<0xFF800000> : vector<1x6xf32>
    %4 = vector.multi_reduction <maximumf>, %0, %cst_3 [2] : vector<1x6x256xf32> to vector<1x6xf32>
    %c0_4 = arith.constant 0 : index
    %c0_5 = arith.constant 0 : index
    %5 = vector.load %arg2[%c0_4, %c0_5] : memref<6x2xf32, #tpu.memory_space<vmem>>, vector<6x2xf32>
    %cst_6 = arith.constant dense<0.000000e+00> : vector<1x2xf32>
    %6 = tpu.matmul %3, %5, %cst_6 {dimension_numbers = #tpu.dot_dimension_numbers<[1], [0], [0], [1], [0, 0, 1, 1], [], []>} : vector<1x6xf32>, vector<6x2xf32>, vector<1x2xf32> -> vector<1x2xf32>
    %c0_7 = arith.constant 0 : index
    %c0_8 = arith.constant 0 : index
    %7 = vector.load %arg3[%c0_7, %c0_8] : memref<6x2xf32, #tpu.memory_space<vmem>>, vector<6x2xf32>
    %cst_9 = arith.constant dense<0.000000e+00> : vector<1x2xf32>
    %8 = tpu.matmul %4, %7, %cst_9 {dimension_numbers = #tpu.dot_dimension_numbers<[1], [0], [0], [1], [0, 0, 1, 1], [], []>} : vector<1x6xf32>, vector<6x2xf32>, vector<1x2xf32> -> vector<1x2xf32>
    %9 = arith.addf %6, %8 : vector<1x2xf32>
    %c0_10 = arith.constant 0 : index
    %c0_11 = arith.constant 0 : index
    %10 = vector.load %arg4[%c0_10, %c0_11] : memref<1x2xf32, #tpu.memory_space<vmem>>, vector<1x2xf32>
    %11 = arith.addf %9, %10 : vector<1x2xf32>
    %cst_12 = arith.constant 0.000000e+00 : f32
    %12 = vector.broadcast %cst_12 : f32 to vector<1x2xf32>
    %13 = arith.maximumf %11, %12 : vector<1x2xf32>
    %14 = vector.broadcast %cst_12 : f32 to vector<1x2xf32>
    %15 = arith.subf %11, %14 : vector<1x2xf32>
    %16 = arith.cmpf one, %15, %15 : vector<1x2xf32>
    %17 = vector.broadcast %cst_12 : f32 to vector<1x2xf32>
    %18 = arith.addf %11, %17 : vector<1x2xf32>
    %19 = math.absf %15 : vector<1x2xf32>
    %cst_13 = arith.constant 0.000000e+00 : f32
    %20 = vector.broadcast %cst_13 : f32 to vector<1x2xf32>
    %21 = arith.subf %20, %19 : vector<1x2xf32>
    %22 = math.exp %21 : vector<1x2xf32>
    %23 = math.log1p %22 : vector<1x2xf32>
    %24 = arith.addf %13, %23 : vector<1x2xf32>
    %25 = arith.select %16, %18, %24 : vector<1x2xi1>, vector<1x2xf32>
    %26 = math.tanh %25 : vector<1x2xf32>
    %27 = arith.mulf %11, %26 : vector<1x2xf32>
    %c0_14 = arith.constant 0 : index
    %c0_15 = arith.constant 0 : index
    %28 = vector.load %arg5[%c0_14, %c0_15] : memref<2x6xf32, #tpu.memory_space<vmem>>, vector<2x6xf32>
    %cst_16 = arith.constant dense<0.000000e+00> : vector<1x6xf32>
    %29 = tpu.matmul %27, %28, %cst_16 {dimension_numbers = #tpu.dot_dimension_numbers<[1], [0], [0], [1], [0, 0, 1, 1], [], []>} : vector<1x2xf32>, vector<2x6xf32>, vector<1x6xf32> -> vector<1x6xf32>
    %c0_17 = arith.constant 0 : index
    %c0_18 = arith.constant 0 : index
    %30 = vector.load %arg7[%c0_17, %c0_18] : memref<1x6xf32, #tpu.memory_space<vmem>>, vector<1x6xf32>
    %31 = arith.addf %29, %30 : vector<1x6xf32>
    %c0_19 = arith.constant 0 : index
    %c0_20 = arith.constant 0 : index
    %32 = vector.load %arg6[%c0_19, %c0_20] : memref<2x6xf32, #tpu.memory_space<vmem>>, vector<2x6xf32>
    %cst_21 = arith.constant dense<0.000000e+00> : vector<1x6xf32>
    %33 = tpu.matmul %27, %32, %cst_21 {dimension_numbers = #tpu.dot_dimension_numbers<[1], [0], [0], [1], [0, 0, 1, 1], [], []>} : vector<1x2xf32>, vector<2x6xf32>, vector<1x6xf32> -> vector<1x6xf32>
    %c0_22 = arith.constant 0 : index
    %c0_23 = arith.constant 0 : index
    %34 = vector.load %arg8[%c0_22, %c0_23] : memref<1x6xf32, #tpu.memory_space<vmem>>, vector<1x6xf32>
    %35 = arith.addf %33, %34 : vector<1x6xf32>
    %36 = arith.negf %31 : vector<1x6xf32>
    %37 = math.exp %36 : vector<1x6xf32>
    %cst_24 = arith.constant 1.000000e+00 : f32
    %38 = vector.broadcast %cst_24 : f32 to vector<1x6xf32>
    %39 = arith.addf %38, %37 : vector<1x6xf32>
    %40 = arith.divf %38, %39 : vector<1x6xf32>
    %41 = vector.shape_cast %40 : vector<1x6xf32> to vector<1x6x1xf32>
    %42 = vector.broadcast %41 : vector<1x6x1xf32> to vector<1x6x256xf32>
    %43 = arith.mulf %42, %0 : vector<1x6x256xf32>
    %44 = vector.shape_cast %35 : vector<1x6xf32> to vector<1x6x1xf32>
    %45 = vector.broadcast %44 : vector<1x6x1xf32> to vector<1x6x256xf32>
    %46 = arith.addf %43, %45 : vector<1x6x256xf32>
    %c0_25 = arith.constant 0 : index
    %c0_26 = arith.constant 0 : index
    %c0_27 = arith.constant 0 : index
    %47 = vector.load %arg9[%c0_25, %c0_26, %c0_27] : memref<1x6x256xf32, #tpu.memory_space<vmem>>, vector<1x6x256xf32>
    tpu.vector_store %arg9[%c0_25, %c0_26, %c0_27], %46 {strides = array<i32>} : memref<1x6x256xf32, #tpu.memory_space<vmem>>, vector<1x6x256xf32>,
    return
  }
  func.func @transform_0(%arg0: i32) -> (i32, i32, i32) {
    %c0_i32 = arith.constant 0 : i32
    %c0_i32_0 = arith.constant 0 : i32
    %c0_i32_1 = arith.constant 0 : i32
    return %arg0, %c0_i32, %c0_i32_0 : i32, i32, i32
  }
  func.func @transform_1(%arg0: i32) -> (i32, i32) {
    %c0_i32 = arith.constant 0 : i32
    %c0_i32_0 = arith.constant 0 : i32
    %c0_i32_1 = arith.constant 0 : i32
    return %c0_i32, %c0_i32_0 : i32, i32
  }
  func.func @transform_2(%arg0: i32) -> (i32, i32) {
    %c0_i32 = arith.constant 0 : i32
    %c0_i32_0 = arith.constant 0 : i32
    %c0_i32_1 = arith.constant 0 : i32
    return %c0_i32, %c0_i32_0 : i32, i32
  }
  func.func @transform_3(%arg0: i32) -> (i32, i32) {
    %c0_i32 = arith.constant 0 : i32
    %c0_i32_0 = arith.constant 0 : i32
    %c0_i32_1 = arith.constant 0 : i32
    return %c0_i32, %c0_i32_0 : i32, i32
  }
  func.func @transform_4(%arg0: i32) -> (i32, i32) {
    %c0_i32 = arith.constant 0 : i32
    %c0_i32_0 = arith.constant 0 : i32
    %c0_i32_1 = arith.constant 0 : i32
    return %c0_i32, %c0_i32_0 : i32, i32
  }
  func.func @transform_5(%arg0: i32) -> (i32, i32) {
    %c0_i32 = arith.constant 0 : i32
    %c0_i32_0 = arith.constant 0 : i32
    %c0_i32_1 = arith.constant 0 : i32
    return %c0_i32, %c0_i32_0 : i32, i32
  }
  func.func @transform_6(%arg0: i32) -> (i32, i32) {
    %c0_i32 = arith.constant 0 : i32
    %c0_i32_0 = arith.constant 0 : i32
    %c0_i32_1 = arith.constant 0 : i32
    return %c0_i32, %c0_i32_0 : i32, i32
  }
  func.func @transform_7(%arg0: i32) -> (i32, i32) {
    %c0_i32 = arith.constant 0 : i32
    %c0_i32_0 = arith.constant 0 : i32
    %c0_i32_1 = arith.constant 0 : i32
    return %c0_i32, %c0_i32_0 : i32, i32
  }
  func.func @transform_8(%arg0: i32) -> (i32, i32, i32) {
    %c0_i32 = arith.constant 0 : i32
    %c0_i32_0 = arith.constant 0 : i32
    %c0_i32_1 = arith.constant 0 : i32
    return %arg0, %c0_i32, %c0_i32_0 : i32, i32, i32
  }
}

</mosaic_0001>

<bundles_post_ra>
// kernel: tpu_custom_call.1
= control target key start
LH: loop header
LB: loop body
LE: loop exit
PB: predicated region body
PF: predicated region fallthrough
CT: control target
= control target key end

     0   :  { %s868_s27 = smov 0   ;;  %s937_s0 = inlined_call_operand.vmem [shape: f32[2,6,256], index: 0, kind: input, shape index: {}]   ;;  %s938_s1 = inlined_call_operand.vmem [shape: f32[6,2], index: 1, kind: input, shape index: {}]   ;;  %s939_s2 = inlined_call_operand.vmem [shape: f32[6,2], index: 2, kind: input, shape index: {}]   ;;  %s940_s3 = inlined_call_operand.vmem [shape: f32[1,2], index: 3, kind: input, shape index: {}]   ;;  %s941_s4 = inlined_call_operand.vmem [shape: f32[2,6], index: 4, kind: input, shape index: {}]   ;;  %s942_s5 = inlined_call_operand.vmem [shape: f32[2,6], index: 5, kind: input, shape index: {}]   ;;  %s943_s6 = inlined_call_operand.vmem [shape: f32[1,6], index: 6, kind: input, shape index: {}]   ;;  %s944_s7 = inlined_call_operand.vmem [shape: f32[1,6], index: 7, kind: input, shape index: {}]   ;;  %s945_s8 = inlined_call_operand.vmem [shape: f32[2,6,256], index: 8, kind: output, shape index: {}]  }
   0x1 LB: > { %s743_s28 = sadd.s32 4294967295, %s819_s27   ;;  %p747_p0 = scmp.ge.s32.totalorder %s819_s27, 1  ;;  %s819_s27 = sphi %s868_s27, %s18_s27  }
   0x2   : > { %p262_p1 = scmp.lt.s32.totalorder %s819_s27, 3 }
   0x4   : > { %p263_p2 = pnand %p747_p0, %p262_p1 }
   0x5   : > { %p296_p3 = scmp.lt.s32.totalorder (!%p263_p2), %s743_s28, 1  ;;  %vm308_vm0 = vcmask (!%p263_p2), 1045504   ;;  %v821_v8 = vmov (!%p263_p2), 0.0   ;;  %v320_v9 = vld [vmem:[%s938_s1] sm:$0x3f] (!%p263_p2)  ;;  %vm822_vm1 = vmmov (!%p263_p2), 0   ;;  %v323_v11 = vlaneseq (!%p263_p2) }
   0x6   : > { %266 = sbr.rel (%p263_p2) target bundleno = 797 (0x31d), region = 52  ;;  %778 = vmatprep.subr.mxu1 (!%p263_p2), %v821_v8  ;;  %773 = vmatprep.subr.mxu0 (!%p263_p2), %v821_v8  ;;  %v321_v10 = vld [vmem:[%s939_s2] sm:$0x3f] (!%p263_p2)  ;;  %vm329_vm2 = vcmask (!%p263_p2), 48128   ;;  %vm513_vm3 = vcmask (!%p263_p2), 1041408   ;;  %vm509_vm6 = vcmask (!%p263_p2), 15360  }
   0x7   : > { %779 = vmatpush3.msk.msra.mxu1 (!%p263_p2), %vm308_vm0, %v320_v9  ;;  %780 = vmatprep.mubr.msk.f32.mxu1 (!%p263_p2), %vm822_vm1, %v821_v8  ;;  %v324_v12 = vand.u32 (!%p263_p2), 127, %v323_v11  ;;  %v906_v13 = vshrl.u32 (!%p263_p2), %v323_v11, 7  ;;  %v507_v20 = vld [vmem:[%s941_s4] sm:$0x3] (!%p263_p2) }
   0x8   : > { %775 = vmatprep.mubr.msk.f32.mxu0 (!%p263_p2), %vm822_vm1, %v821_v8  ;;  %788 = vmatprep.subr.mxu1 (!%p263_p2), %v821_v8  ;;  %v587_v21 = vld [vmem:[%s942_s5] sm:$0x3] (!%p263_p2) }
   0x9   : > { %774 = vmatpush3.msk.msra.mxu0 (!%p263_p2), %vm308_vm0, %v321_v10  ;;  %v327_v14 = vsub.s32 (!%p263_p2), %v324_v12, %v906_v13  ;;  %v485_v25 = vld [vmem:[%s940_s3] sm:$0x1] (!%p263_p2)  ;;  %v670_v56 = vsub.s32 (!%p263_p2), 0, %v906_v13 }
   0xa   : > { %783 = vmatprep.subr.mxu0 (!%p263_p2), %v821_v8  ;;  %v508_v46 = vld [vmem:[%s943_s6] sm:$0x1] (!%p263_p2) }
   0xb   : > { %v588_v55 = vld [vmem:[%s944_s7] sm:$0x1] (!%p263_p2) }
   0xd   : > { %s947_s28 = smov (!%p296_p3, %s743_s28), 1 }
   0xe   : > { %s763_s29 = sshll.u32 %s947_s28, 4 }
   0xf   : > { %s300_s10 = scalar_lea.vmem %s937_s0, %s763_s29  ;;  %s305_s30 = scalar_lea.vmem %s945_s8, %s763_s29 }
  0x10   : > { %v884_v0 = vld [vmem:[%s300_s10] sm:$0x3f]  ;;  %v886_v1 = vld [vmem:[%s300_s10 + $0x8] sm:$0x3f] }
  0x11   : > { %v309_v2 = vsel %vm308_vm0, %v884_v0, 0.0  ;;  %v310_v3 = vsel %vm308_vm0, %v886_v1, 0.0  ;;  %v315_v4 = vsel %vm308_vm0, %v884_v0, -inf  ;;  %v316_v5 = vsel %vm308_vm0, %v886_v1, -inf }
  0x12   : > { %v311_v6 = vadd.f32 %v310_v3, %v309_v2  ;;  %v317_v7 = vmax.f32 %v315_v4, %v316_v5 }
  0x14   : > { %312 = vadd.xlane.f32.xlu0 %v311_v6 }
  0x18   : > { %318 = vmax.xlane.f32.xlu0 %v317_v7 }
  0xa1   : > { %v313_v15 = vpop.xlane.xlu0 %312 }
  0xa2   : > { %v314_v16 = vmul.f32 0.00390625, %v313_v15 }
  0xa4   : > { %v409_v17 = vrot.slane %v314_v16, %v327_v14 }
  0xa5   : > { %v319_v18 = vpop.xlane.xlu0 %318 }
  0xa6   : > { %v328_v19 = vrot.slane %v319_v18, %v327_v14  ;;  %781 = vmatmul.mubr.msk.f32.vlgmr.msra.gmra.mrb[0].mxu1 %vm329_vm2, %v409_v17 }
  0xa7   : > { %790 = vmatprep.mubr.msk.f32.mxu1 %vm822_vm1, %v821_v8  ;;  %789 = vmatpush3.msk.msra.mxu1 %vm513_vm3, %v587_v21 }
  0xa8   : > { %776 = vmatmul.mubr.msk.f32.vlgmr.msra.gmra.mrb[0].mxu0 %vm329_vm2, %v328_v19 }
  0xa9   : > { %785 = vmatprep.mubr.msk.f32.mxu0 %vm822_vm1, %v821_v8  ;;  %784 = vmatpush3.msk.msra.mxu0 %vm513_vm3, %v507_v20 }
 0x179   : > { %v481_v22 = vpop.f32.mrb[0].mxu1 }
 0x17a   : > { %v782_v23 = vpop.f32.mrb[1].mxu1 }
 0x17b   : > { %v401_v24 = vpop.f32.mrb[0].mxu0 }
 0x17c   : > { %v482_v26 = vadd.f32 %v481_v22, %v401_v24  ;;  %v777_v27 = vpop.f32.mrb[1].mxu0 }
 0x17e   : > { %v486_v28 = vadd.f32 %v485_v25, %v482_v26 }
 0x180   : > { %v490_v29 = vand.u32 2147483647, %v486_v28  ;;  %v487_v40 = vmax.f32 %v486_v28, 0.0  ;;  %vm488_vm5 = vcmp.ne.f32.partialorder %v486_v28, %v486_v28 }
 0x182   : > { %v491_v30 = vsub.f32 0.0, %v490_v29 }
 0x184   : > { %v492_v31 = vmul.f32 1.442695, %v491_v30 }
 0x186   : > { %803 = vpow2.f32 %v492_v31 }
 0x190   : > { %v804_v32 = vpop.eup %803 }
 0x191   : > { %v494_v33 = vadd.f32 1.0, %v804_v32  ;;  %v497_v34 = vmul.f32 -0.5, %v804_v32  ;;  %v500_v36 = vand.u32 2147483647, %v804_v32 }
 0x193   : > { %805 = vlog2.f32 %v494_v33  ;;  %v498_v35 = vadd.f32 1.0, %v497_v34  ;;  %vm501_vm4 = vcmp.lt.f32.partialorder %v500_v36, 0.0004427343 }
 0x195   : > { %v499_v39 = vmul.f32 %v804_v32, %v498_v35 }
 0x19d   : > { %v806_v37 = vpop.eup %805 }
 0x19e   : > { %v496_v38 = vmul.f32 0.6931472, %v806_v37 }
 0x1a0   : > { %v502_v41 = vsel %vm501_vm4, %v499_v39, %v496_v38 }
 0x1a1   : > { %v503_v42 = vadd.f32 %v502_v41, %v487_v40 }
 0x1a3   : > { %v504_v43 = vsel %vm488_vm5, %v486_v28, %v503_v42 }
 0x1a4   : > { %807 = vtanh.f32 %v504_v43 }
 0x1ae   : > { %v808_v44 = vpop.eup %807 }
 0x1af   : > { %v506_v45 = vmul.f32 %v808_v44, %v486_v28 }
 0x1b1   : > { %786 = vmatmul.mubr.msk.f32.vlgmr.msra.gmra.mrb[2].mxu0 %vm509_vm6, %v506_v45  ;;  %791 = vmatmul.mubr.msk.f32.vlgmr.msra.gmra.mrb[2].mxu1 %vm509_vm6, %v506_v45 }
 0x284   : > { %v583_v47 = vpop.f32.mrb[2].mxu0  ;;  %v658_v48 = vpop.f32.mrb[2].mxu1 }
 0x285   : > { %v584_v49 = vadd.f32 %v583_v47, %v508_v46  ;;  %v787_v50 = vpop.f32.mrb[3].mxu0  ;;  %v792_v51 = vpop.f32.mrb[3].mxu1  ;;  %v659_v58 = vadd.f32 %v658_v48, %v588_v55 }
 0x287   : > { %v760_v52 = vmul.f32 -1.442695, %v584_v49  ;;  %v680_v60 = vrot.slane %v659_v58, %v670_v56 }
 0x289   : > { %809 = vpow2.f32 %v760_v52 }
 0x293   : > { %v810_v53 = vpop.eup %809 }
 0x294   : > { %v665_v54 = vadd.f32 1.0, %v810_v53 }
 0x296   : > { %811 = vrcp.f32 %v665_v54 }
 0x2a0   : > { %v812_v57 = vpop.eup %811 }
 0x2a1   : > { %v671_v59 = vrot.slane %v812_v57, %v670_v56 }
 0x2a3   : > { %673 = vbcast.lane.b32.xlu1 %v671_v59, 256 }
 0x2a7   : > { %682 = vbcast.lane.b32.xlu1 %v680_v60, 256 }
 0x315   : > { %v674_v61 = vpop.permute.xlu1 %673 }
 0x316   : > { %v675_v62 = vmul.f32 %v674_v61, %v884_v0  ;;  %v676_v63 = vmul.f32 %v674_v61, %v886_v1 }
 0x319   : > { %v683_v2 = vpop.permute.xlu1 %682 }
 0x31a   : > { %v684_v3 = vadd.f32 %v683_v2, %v675_v62  ;;  %v685_v4 = vadd.f32 %v683_v2, %v676_v63 }
 0x31c   : > { %686 = vst [vmem:[%s305_s30] sm:$0x3f] %v684_v3  ;;  %687 = vst [vmem:[%s305_s30 + $0x8] sm:$0x3f] %v685_v4 }
 0x31d PF: > { %s18_s27 = sadd.s32 1, %s819_s27  }
 0x31e   : > { %p15_p4 = scmp.ge.s32.totalorder %s18_s27, 4  }
 0x320   :  { %17 = sbr.rel (!%p15_p4) target bundleno = 1 (0x1), region = 82 }

</bundles_post_ra>
